<compile_context>
chip_gen: v7x
topology: tpu7x:2x2x1
jax: 0.10.0
libtpu: 0.0.40
codegen_flags: <defaults>
</compile_context>

<pallas_src>
import jax
import jax.numpy as jnp
import numpy as np
from jax.experimental import pallas as pl
from jax.experimental.pallas import tpu as pltpu

_VMEM_LIMIT_BYTES = 48 * 1024 * 1024     # > v5e's 16 MiB default, < v7x's 64 MiB
_VMEM_TILE_BUDGET = 40 * 1024 * 1024     # tile-sizing budget, leaves headroom


# ---------------------------------------------------------------------------
# Stage 1: per-relation feature transform  XW[r] = X[src(r)] @ W_r  (hoisted)
# ---------------------------------------------------------------------------
def _xw_kernel(src_t_ref, x_ref, w_ref, xw_ref):
    del src_t_ref                               # consumed only by the index_maps
    xw_ref[0] = jnp.dot(x_ref[0], w_ref[0],
                        preferred_element_type=jnp.float32).astype(xw_ref.dtype)


def _relation_transform(x_bf, w_bf, src_t):
    T, N, F_in = x_bf.shape
    R, _, F_out = w_bf.shape

    grid_spec = pltpu.PrefetchScalarGridSpec(
        num_scalar_prefetch=1,
        grid=(R,),
        in_specs=[
            pl.BlockSpec((1, N, F_in), lambda r, st: (st[r], 0, 0)),
            pl.BlockSpec((1, F_in, F_out), lambda r, st: (r, 0, 0)),
        ],
        out_specs=pl.BlockSpec((1, N, F_out), lambda r, st: (r, 0, 0)),
    )
    flops = R * 2 * N * F_in * F_out
    bytes_accessed = 2 * (R * N * F_in + R * F_in * F_out + R * N * F_out)
    return pl.pallas_call(
        _xw_kernel,
        out_shape=jax.ShapeDtypeStruct((R, N, F_out), jnp.bfloat16),
        grid_spec=grid_spec,
        compiler_params=pltpu.CompilerParams(
            dimension_semantics=("parallel",),
            vmem_limit_bytes=_VMEM_LIMIT_BYTES),
        cost_estimate=pl.CostEstimate(flops=flops, transcendentals=0,
                                      bytes_accessed=bytes_accessed),
    )(src_t, x_bf, w_bf)


# ---------------------------------------------------------------------------
# Stage 2: per-dst-type relation accumulation + self loop + ReLU
# ---------------------------------------------------------------------------
def _agg_kernel(rel_id_ref, dst_t_ref, first_ref, last_ref, valid_ref,
                a_ref, xw_ref, x_self_ref, loop_w_ref, out_ref, acc_ref):
    del rel_id_ref, dst_t_ref                   # consumed only by the index_maps
    e = pl.program_id(1)

    # Segment start: seed the accumulator with the self-loop term X[t] @ loop_w.
    @pl.when(first_ref[e] == 1)
    def _():
        acc_ref[...] = jnp.dot(x_self_ref[0], loop_w_ref[...],
                               preferred_element_type=jnp.float32)

    # Real relation entry: accumulate mean-aggregated messages A_r @ XW_r.
    @pl.when(valid_ref[e] == 1)
    def _():
        acc_ref[...] += jnp.dot(a_ref[0], xw_ref[0],
                                preferred_element_type=jnp.float32)

    # Segment end: ReLU (dropout p=0.0 == identity); lane-dense bf16 store.
    @pl.when(last_ref[e] == 1)
    def _():
        out_ref[0] = jnp.maximum(acc_ref[...], 0.0).astype(out_ref.dtype)


def _pick_dst_tile(N, F_in, F_out, budget_bytes):
    """Largest dst-node tile (N itself, or a multiple of 8 dividing N) whose
    double-buffered working set fits the VMEM budget."""
    cands = sorted({N} | {d for d in range(8, N, 8) if N % d == 0}, reverse=True)
    for nt in cands:
        a = nt * N * 2                       # A_r dst tile        (bf16)
        xw = N * F_out * 2                   # XW_r slab           (bf16)
        xs = nt * F_in * 2                   # X[t] dst tile       (bf16)
        lw = F_in * F_out * 2                # loop weight         (bf16)
        out = nt * F_out * 2                 # output tile         (bf16)
        acc = nt * F_out * 4                 # accumulator scratch (f32)
        if 2 * (a + xw + xs + lw + out) + acc <= budget_bytes:
            return nt
    return 8


def rgcn_forward(x, adj, w_rel, loop_w, src_type, dst_type, *, dst_tile=None):
    """x: [T,N,F_in], adj: [R,N,N] row-normalized (dst x src), w_rel: [R,F_in,F_out]."""
    T, N, F_in = x.shape
    R = adj.shape[0]
    F_out = w_rel.shape[-1]

    # ---- bf16 MXU operands (accumulation stays f32 inside the kernels) ----
    x_bf = x.astype(jnp.bfloat16)
    adj_bf = adj.astype(jnp.bfloat16)
    w_bf = w_rel.astype(jnp.bfloat16)
    lw_bf = loop_w.astype(jnp.bfloat16)

    src_np = np.asarray(src_type, dtype=np.int32)
    dst_np = np.asarray(dst_type, dtype=np.int32)
    src_t = jnp.asarray(src_np)

    # ---- stage 1: hoisted per-relation transform ----
    xw = _relation_transform(x_bf, w_bf, src_t)

    # ---- static ragged segment table (grouped by dst type), scalar-prefetched ----
    # One entry per (dst type, incoming relation). Dst types with no incoming
    # relation get one self-loop-only entry (valid=0) so their output is still
    # written (the reference simply drops such types from its output dict).
    entries = []
    for t in range(T):
        rels = np.nonzero(dst_np == t)[0]
        if len(rels) == 0:
            entries.append((0, t, 1, 1, 0))
        else:
            for j, r in enumerate(rels):
                entries.append((int(r), t, int(j == 0), int(j == len(rels) - 1), 1))
    ent = np.asarray(entries, dtype=np.int32)            # [E, 5]
    E = ent.shape[0]
    rel_id = jnp.asarray(ent[:, 0])
    dst_t = jnp.asarray(ent[:, 1])
    seg_first = jnp.asarray(ent[:, 2])
    seg_last = jnp.asarray(ent[:, 3])
    valid = jnp.asarray(ent[:, 4])
    e_real = int(ent[:, 4].sum())

    # ---- dst-node tile: biggest that fits the VMEM budget (N here) ----
    nt = dst_tile if dst_tile is not None else _pick_dst_tile(
        N, F_in, F_out, _VMEM_TILE_BUDGET)
    assert N % nt == 0
    n_tiles = N // nt
    # NOTE(v7x): with n_tiles == 1 the only 'parallel' axis has extent 1 so one
    # TensorCore idles on this toy config; at larger N the tile picker yields
    # n_tiles >= 2 and the dst-tile axis spreads over both cores.

    # index_maps receive (n, e, rel_id, dst_t, first, last, valid) positionally.
    grid_spec = pltpu.PrefetchScalarGridSpec(
        num_scalar_prefetch=5,
        grid=(n_tiles, E),
        in_specs=[
            # A_r dst-node tile : [nt, N]
            pl.BlockSpec((1, nt, N),
                         lambda n, e, rid, dt, fi, la, va: (rid[e], n, 0)),
            # XW_r slab : [N, F_out]
            pl.BlockSpec((1, N, F_out),
                         lambda n, e, rid, dt, fi, la, va: (rid[e], 0, 0)),
            # X[t] dst-node tile (self loop)
            pl.BlockSpec((1, nt, F_in),
                         lambda n, e, rid, dt, fi, la, va: (dt[e], n, 0)),
            # loop weight
            pl.BlockSpec((F_in, F_out),
                         lambda n, e, rid, dt, fi, la, va: (0, 0)),
        ],
        out_specs=pl.BlockSpec((1, nt, F_out),
                               lambda n, e, rid, dt, fi, la, va: (dt[e], n, 0)),
        scratch_shapes=[pltpu.VMEM((nt, F_out), jnp.float32)],
    )

    flops = (T * 2 * N * F_in * F_out          # self loop
             + e_real * 2 * N * N * F_out)     # A_r @ XW_r (hoisted XW, no recompute)
    bytes_accessed = (2 * (e_real * n_tiles * nt * N      # A tiles
                           + E * n_tiles * N * F_out      # XW slabs
                           + T * N * F_in                 # X[t]
                           + F_in * F_out)                # loop weight
                      + 2 * T * N * F_out)                # bf16 output

    return pl.pallas_call(
        _agg_kernel,
        out_shape=jax.ShapeDtypeStruct((T, N, F_out), jnp.bfloat16),
        grid_spec=grid_spec,
        compiler_params=pltpu.CompilerParams(
            dimension_semantics=("parallel", "arbitrary"),
            vmem_limit_bytes=_VMEM_LIMIT_BYTES),
        cost_estimate=pl.CostEstimate(flops=flops, transcendentals=0,
                                      bytes_accessed=bytes_accessed),
    )(rel_id, dst_t, seg_first, seg_last, valid, adj_bf, xw, x_bf, lw_bf)


# ---------------------------------------------------------------------------
# Host-side helpers / reference
# ---------------------------------------------------------------------------
def _xavier_uniform(key, shape, gain):
    # torch.nn.init.xavier_uniform_ fan computation
    if len(shape) == 2:
        fan_in, fan_out = shape[1], shape[0]
    else:
        receptive = int(np.prod(shape[2:]))
        fan_in, fan_out = shape[1] * receptive, shape[0] * receptive
    bound = gain * np.sqrt(6.0 / (fan_in + fan_out))
    return jax.random.uniform(key, shape, jnp.float32, -bound, bound)


def _reference(x, adj, w_rel, loop_w, src_type, dst_type):
    T, N, _ = x.shape
    R = adj.shape[0]
    outs = []
    for t in range(T):
        h = x[t] @ loop_w
        for r in range(R):
            if int(dst_type[r]) == t:
                h = h + adj[r] @ (x[int(src_type[r])] @ w_rel[r])
        outs.append(jnp.maximum(h, 0.0))
    return jnp.stack(outs, axis=0)


if __name__ == "__main__":
    # ---- module hyper-params (lane-dense / MXU-friendly but still small) ----
    in_feat, out_feat = 128, 128
    rel_names = ["follows", "buys", "bought-by"]       # num_rels = 3
    num_rels = len(rel_names)
    num_bases = 2                                      # exercise the w_comp path
    T = 2                                              # node types: user, item
    N = 256                                            # nodes per type (padded equal)

    # relation r: srctype -> dsttype (each dst type targeted by >=1 relation)
    src_type = jnp.array([0, 0, 1], dtype=jnp.int32)
    dst_type = jnp.array([0, 1, 0], dtype=jnp.int32)

    key = jax.random.PRNGKey(0)
    k_w, k_comp, k_loop, k_x, k_adj = jax.random.split(key, 5)
    gain = float(np.sqrt(2.0))                         # calculate_gain('relu')

    # ---- parameters (deterministic init, shapes from __init__) ----
    weight = _xavier_uniform(k_w, (num_bases, in_feat, out_feat), gain)
    w_comp = _xavier_uniform(k_comp, (num_rels, num_bases), gain)
    loop_weight = _xavier_uniform(k_loop, (in_feat, out_feat), gain)
    # h_bias exists in __init__ but is unused in the reference forward.

    # basis_weight(): W_r = (w_comp @ bases) since num_bases < num_rels
    w_rel = (w_comp @ weight.reshape(num_bases, in_feat * out_feat)
             ).reshape(num_rels, in_feat, out_feat)

    # ---- inputs: node features per type, per-relation graphs ----
    x = jax.random.normal(k_x, (T, N, in_feat), jnp.float32)
    adj_raw = jax.random.bernoulli(k_adj, 0.3, (num_rels, N, N)).astype(jnp.float32)
    deg = adj_raw.sum(axis=-1, keepdims=True)
    adj = jnp.where(deg > 0, adj_raw / jnp.maximum(deg, 1.0), 0.0)  # mean agg

    # Snap values to bf16-representable so the kernel's bf16 MXU path and the
    # pure-f32 reference consume identical inputs (accumulation is f32 both ways).
    snap = lambda a: a.astype(jnp.bfloat16).astype(jnp.float32)
    x, adj, w_rel, loop_weight = snap(x), snap(adj), snap(w_rel), snap(loop_weight)

    # ---- run kernel ----
    out = rgcn_forward(x, adj, w_rel, loop_weight, src_type, dst_type)
    out = jax.block_until_ready(out)

    # ---- correctness check against pure-JAX f32 reference ----
    ref = _reference(x, adj, w_rel, loop_weight,
                     np.array(src_type), np.array(dst_type))
    np.testing.assert_allclose(np.asarray(out, dtype=np.float32), np.asarray(ref),
                               rtol=2e-2, atol=2e-2)
    print("KERNEL_OK")
</pallas_src>

<mosaic_0001>
module attributes {stable_mosaic.version = 11 : i64} {
  func.func @_xw_kernel(%arg0: i32, %arg1: memref<3xi32, #tpu.memory_space<smem>>, %arg2: memref<1x256x128xbf16, #tpu.memory_space<vmem>>, %arg3: memref<1x128x128xbf16, #tpu.memory_space<vmem>>, %arg4: memref<1x256x128xbf16, #tpu.memory_space<vmem>>) attributes {dimension_semantics = [#tpu.dimension_semantics<parallel>], iteration_bounds = array<i64: 3>, scalar_prefetch = 1 : i64, scratch_operands = 0 : i64, tpu.core_type = #tpu.core_type<tc>, window_params = [{transform_indices = @transform_0, window_bounds = array<i64: 1, 256, 128>}, {transform_indices = @transform_1, window_bounds = array<i64: 1, 128, 128>}, {transform_indices = @transform_2, window_bounds = array<i64: 1, 256, 128>}]} {
    %c0 = arith.constant 0 : index
    %c0_0 = arith.constant 0 : index
    %c0_1 = arith.constant 0 : index
    %0 = vector.load %arg2[%c0, %c0_0, %c0_1] : memref<1x256x128xbf16, #tpu.memory_space<vmem>>, vector<1x256x128xbf16>
    %1 = vector.shape_cast %0 : vector<1x256x128xbf16> to vector<256x128xbf16>
    %c0_2 = arith.constant 0 : index
    %c0_3 = arith.constant 0 : index
    %c0_4 = arith.constant 0 : index
    %2 = vector.load %arg3[%c0_2, %c0_3, %c0_4] : memref<1x128x128xbf16, #tpu.memory_space<vmem>>, vector<1x128x128xbf16>
    %3 = vector.shape_cast %2 : vector<1x128x128xbf16> to vector<128x128xbf16>
    %cst = arith.constant dense<0.000000e+00> : vector<256x128xf32>
    %4 = tpu.matmul %1, %3, %cst {dimension_numbers = #tpu.dot_dimension_numbers<[1], [0], [0], [1], [0, 0, 1, 1], [], []>} : vector<256x128xbf16>, vector<128x128xbf16>, vector<256x128xf32> -> vector<256x128xf32>
    %5 = arith.truncf %4 : vector<256x128xf32> to vector<256x128xbf16>
    %c0_5 = arith.constant 0 : index
    %c0_6 = arith.constant 0 : index
    %c0_7 = arith.constant 0 : index
    %6 = vector.load %arg4[%c0_5, %c0_6, %c0_7] : memref<1x256x128xbf16, #tpu.memory_space<vmem>>, vector<1x256x128xbf16>
    %7 = vector.shape_cast %6 : vector<1x256x128xbf16> to vector<256x128xbf16>
    %8 = vector.shape_cast %5 : vector<256x128xbf16> to vector<1x256x128xbf16>
    tpu.vector_store %arg4[%c0_5, %c0_6, %c0_7], %8 {strides = array<i32>} : memref<1x256x128xbf16, #tpu.memory_space<vmem>>, vector<1x256x128xbf16>,
    return
  }
  func.func @transform_0(%arg0: i32, %arg1: memref<3xi32, #tpu.memory_space<smem>>) -> (i32, i32, i32) {
    %0 = arith.index_cast %arg0 : i32 to index
    %1 = memref.load %arg1[%0] : memref<3xi32, #tpu.memory_space<smem>>
    %c0_i32 = arith.constant 0 : i32
    %c0_i32_0 = arith.constant 0 : i32
    %c0_i32_1 = arith.constant 0 : i32
    return %1, %c0_i32, %c0_i32_0 : i32, i32, i32
  }
  func.func @transform_1(%arg0: i32, %arg1: memref<3xi32, #tpu.memory_space<smem>>) -> (i32, i32, i32) {
    %c0_i32 = arith.constant 0 : i32
    %c0_i32_0 = arith.constant 0 : i32
    %c0_i32_1 = arith.constant 0 : i32
    return %arg0, %c0_i32, %c0_i32_0 : i32, i32, i32
  }
  func.func @transform_2(%arg0: i32, %arg1: memref<3xi32, #tpu.memory_space<smem>>) -> (i32, i32, i32) {
    %c0_i32 = arith.constant 0 : i32
    %c0_i32_0 = arith.constant 0 : i32
    %c0_i32_1 = arith.constant 0 : i32
    return %arg0, %c0_i32, %c0_i32_0 : i32, i32, i32
  }
}

</mosaic_0001>

<bundles_post_ra>
// kernel: tpu_custom_call.1
= control target key start
LH: loop header
LB: loop body
LE: loop exit
PB: predicated region body
PF: predicated region fallthrough
CT: control target
= control target key end

     0   :  { %s1756_s0 = inlined_call_operand.hbm [shape: s32[3], index: 0, kind: input, shape index: {}]   ;;  %s1757_s1 = inlined_call_operand.hbm [shape: bf16[2,256,128], index: 1, kind: input, shape index: {}]   ;;  %s1758_s2 = inlined_call_operand.hbm [shape: bf16[3,128,128], index: 2, kind: input, shape index: {}]   ;;  %s1759_s3 = inlined_call_operand.hbm [shape: bf16[3,256,128], index: 3, kind: output, shape index: {}]  }
   0x1   :  { %s1235_s14 = scalar_lea.hbm %s1756_s0, 16 }
   0x2   :  { %p1236_p0 = scmp.ne.s32.totalorder %s1756_s0, %s1235_s14  ;;  %p1239_p1 = scmp.lt.u32.totalorder %s1235_s14, %s1756_s0 }
   0x4   :  { %p1241_p2 = pnand %p1239_p1, %p1236_p0 }
   0x6   :  { %1244 = shalt.err (!%p1241_p2)  }
   0x7   :  { %s1403_s19 = smov [#allocation3]  }
   0x8   :  { %9 = dma.hbm_to_smem %s1756_s0, 16, %s1403_s19, [#allocation2] }
   0x9   :  { %1361 = dma.done.wait [#allocation2], 16 }
   0xa   :  { %1362 = vsyncadd [#allocation2], 4294967280 }
   0xb   :  { %11 = sfence }
   0xc   :  { %12 = vsyncpa [#allocation5], 0 }
   0xd   :  { %14 = vsyncpa [#allocation5 + $0x1], 0 }
   0xe   :  { %15 = vsyncpa [#allocation8], 0 }
   0xf   :  { %17 = vsyncpa [#allocation8 + $0x1], 0 }
  0x10   :  { %18 = vsyncpa [#allocation6], 0 }
  0x11   :  { %20 = vsyncpa [#allocation6 + $0x1], 0  ;;  %s1443_s22 = smov 0   ;;  %s1445_s23 = smov 0  }
  0x12   :  { %s1447_s24 = smov 0   ;;  %s1449_s25 = smov 0  }
  0x13   :  { %s1451_s26 = smov 0   ;;  %s1453_s0 = smov 0  }
  0x14   :  { %s1455_s27 = smov 0  }
  0x15 LB: > { %s1477_s28 = sadd.s32 4294967295, %s1401_s27   ;;  %s1480_s29 = sadd.s32 1, %s1401_s27   ;;  %s1401_s27 = sphi %s1455_s27, %s1790_s27   ;;  %s1397_s0 = sphi %s1453_s0, %s1789_s0   ;;  %s1393_s26 = sphi %s1451_s26, %s1788_s26   ;;  %s1389_s25 = sphi %s1449_s25, %s1787_s25   ;;  %s1385_s24 = sphi %s1447_s24, %s1786_s24   ;;  %s1381_s23 = sphi %s1445_s23, %s1785_s23   ;;  %s1377_s22 = sphi %s1443_s22, %s1784_s22  }
  0x16   : > { %s30_s30 = sld [smem:[#allocation3 + %s1401_s27]]  ;;  %s35_s5 = sadd.s32 1, %s1397_s0 }
  0x17   : > { %s31_s4 = sld [smem:[#allocation3 + %s1480_s29]]  ;;  %p42_p3 = scmp.ne.s32.totalorder %s1397_s0, %s1393_s26 }
  0x18   : > { %p1762_p4 = scmp.eq.s32.totalorder %s1401_s27, 0  ;;  %p48_p5 = scmp.ne.s32.totalorder %s1393_s26, %s1389_s25 }
  0x19   : > { %p1761_p6 = scmp.eq.s32.totalorder %s1477_s28, 0  ;;  %p1760_p8 = scmp.lt.s32.totalorder %s1401_s27, 3 }
  0x1a   : > { %p44_p7 = por %p1762_p4, %p42_p3  ;;  %s124_s7 = sand.u32 1, %s1397_s0  }
  0x1b   : > { %p1495_p9 = por %p1761_p6, %p48_p5  ;;  %s838_s9 = sshll.u32 %s124_s7, 7 }
  0x1c   : > { %p1502_p11 = pnand %p1760_p8, %p44_p7  ;;  %s128_s14 = scalar_lea.vmem [#allocation4], %s838_s9 }
  0x1d   : > { %s1768_s6 = scalar_select %p1495_p9, 1, 0 }
  0x1e   : > { %s32_s8 = ssub.s32 %s30_s30, %s31_s4  ;;  %s136_s15 = sshll.u32 %s128_s14, 4  ;;  %s1514_s15 = int_to_ptr.vmem [resolvable:$true] %s136_s15 }
  0x1f   : > { %p33_p10 = scmp.eq.s32.totalorder %s32_s8, 0  ;;  %p844_p12 = scmp.ge.s32.totalorder %s1401_s27, 1 }
  0x20   : > { %s1127_s12 = scalar_select %p44_p7, [#allocation3], [#allocation10] }
  0x21   : > { %s1507_s11 = scalar_select %p33_p10, %s1397_s0, %s35_s5  }
  0x22   : > { %s1128_s13 = scalar_select %p44_p7, %s1401_s27, 0 }
  0x23   : > { %s1792_s12 = smov (!%p1760_p8, %s1127_s12), [#allocation11]  ;;  %p165_p13 = scmp.lt.s32.totalorder %s1401_s27, 4 }
  0x24   : > { %s1794_s13 = smov (!%p1760_p8, %s1128_s13), 0  ;;  %s835_s25 = sadd.s32 4294967294, %s1401_s27  }
  0x25   : > { %s129_s16 = sld [smem:[%s1792_s12 + %s1794_s13]]  ;;  %p1518_p0 = pnand %p844_p12, %p165_p13 }
  0x26   : > { %s1528_s30 = scalar_lea.sflag [#allocation5], %s124_s7  ;;  %p1247_p2 = pneg %p1502_p11 }
  0x27   : > { %s1250_s9 = scalar_lea.hbm %s1757_s1, 4096 }
  0x2b   : > { %s909_s18 = sshll.u32 %s129_s16, 11 }
  0x2c   : > { %s1525_s21 = scalar_lea.hbm %s1757_s1, %s909_s18 }
  0x2d   : > { %s1245_s4 = scalar_lea.hbm %s1525_s21, 2048  ;;  %p1251_p7 = scmp.lt.u32.totalorder %s1525_s21, %s1757_s1 }
  0x2e   : > { %p1246_p1 = scmp.ne.s32.totalorder %s1525_s21, %s1245_s4  ;;  %p1252_p10 = scmp.lt.u32.totalorder %s1250_s9, %s1245_s4 }
  0x2f   : > { %p1254_p13 = scmp.lt.u32.totalorder %s1245_s4, %s1525_s21 }
  0x30   : > { %p1248_p3 = pnand %p1247_p2, %p1246_p1  ;;  %p1253_p12 = por %p1252_p10, %p1251_p7 }
  0x32   : > { %p1249_p5 = pneg %p1248_p3  ;;  %p1255_p8 = por %p1254_p13, %p1253_p12 }
  0x34   : > { %p1256_p6 = pnand %p1255_p8, %p1249_p5 }
  0x36   : > { %1259 = shalt.err (!%p1256_p6)
}
  0x37   : > { %s1260_s7 = scalar_lea.vmem %s1514_s15, 2048  ;;  %s1404_s14 = smov [#allocation4]  }
  0x38   : > { %p1261_p1 = scmp.ne.s32.totalorder %s1514_s15, %s1260_s7  ;;  %s1265_s16 = sshll.u32 %s1404_s14, 4  ;;  %s1266_s16 = int_to_ptr.vmem [resolvable:$false] %s1265_s16 }
  0x39   : > { %s1267_s18 = scalar_lea.vmem %s1266_s16, 4096  ;;  %p1268_p9 = scmp.lt.s32.totalorder %s1514_s15, %s1266_s16 }
  0x3a   : > { %p1263_p3 = pnand %p1261_p1, %p1247_p2  ;;  %p1269_p7 = scmp.lt.s32.totalorder %s1267_s18, %s1260_s7 }
  0x3c   : > { %p1264_p4 = pneg %p1263_p3  ;;  %p1270_p10 = por %p1269_p7, %p1268_p9 }
  0x3e   : > { %p1271_p12 = pnand %p1270_p10, %p1264_p4 }
  0x40   : > { %1274 = shalt.err (!%p1271_p12)
}
  0x41   : > { %s1764_s19 = smov 64   ;;  %s1765_s20 = smov 4  }
  0x42   : > { %1140 = dma.hbm_to_vmem [thread:$0]  (!%p1502_p11), %s1525_s21, 2048, %s1514_s15, %s1528_s30, %s1764_s19, %s1764_s19, %s1765_s20  }
  0x43   : > { %s58_s4 = ssub.s32 %s1401_s27, %s1480_s29  ;;  %s61_s5 = sadd.s32 1, %s1385_s24 }
  0x44   : > { %p59_p4 = scmp.eq.s32.totalorder %s58_s4, 0  ;;  %p68_p6 = scmp.ne.s32.totalorder %s1385_s24, %s1381_s23 }
  0x45   : > { %p74_p8 = scmp.ne.s32.totalorder %s1381_s23, %s1377_s22  ;;  %p98_p9 = scmp.eq.s32.totalorder %s1477_s28, 2 }
  0x46   : > { %s1568_s8 = scalar_select %p59_p4, %s1385_s24, %s61_s5  }
  0x47   : > { %p1771_p2 = scmp.eq.s32.totalorder %s1401_s27, 0  ;;  %p1772_p13 = scmp.eq.s32.totalorder %s1477_s28, 0 }
  0x48   : > { %p1578_p3 = por %p98_p9, %p68_p6  ;;  %p104_p11 = scmp.eq.s32.totalorder %s835_s25, 2 }
  0x49   : > { %p70_p5 = por %p68_p6, %p1771_p2  ;;  %p1574_p1 = por %p74_p8, %p1772_p13 }
  0x4a   : > { %s1774_s10 = scalar_select %p1578_p3, 1, 0 }
  0x4b   : > { %s1773_s9 = scalar_select %p1574_p1, 1, 0 }
  0x4c   : > { %s146_s15 = sand.u32 1, %s1385_s24   ;;  %s910_s21 = sshll.u32 %s1401_s27, 10 }
  0x4d   : > { %p1586_p7 = por %p104_p11, %p74_p8  ;;  %s841_s12 = sshll.u32 %s146_s15, 6 }
  0x4e   : > { %s1593_s14 = scalar_lea.hbm %s1758_s2, %s910_s21  ;;  %p1776_p10 = scmp.lt.s32.totalorder %s1401_s27, 3 }
  0x4f   : > { %s1775_s30 = scalar_select %p1586_p7, 1, 0 }
  0x50   : > { %p1597_p12 = pnand %p1776_p10, %p70_p5  ;;  %s150_s25 = scalar_lea.vmem [#allocation7], %s841_s12 }
  0x51   : > { %s157_s18 = sshll.u32 %s150_s25, 4  ;;  %s1603_s4 = scalar_lea.sflag [#allocation8], %s146_s15  ;;  %s1601_s18 = int_to_ptr.vmem [resolvable:$true] %s157_s18 }
  0x52   : > { %s1275_s5 = scalar_lea.hbm %s1593_s14, 1024  ;;  %p1277_p6 = pneg %p1597_p12 }
  0x53   : > { %p1276_p4 = scmp.ne.s32.totalorder %s1593_s14, %s1275_s5  ;;  %s1280_s7 = scalar_lea.hbm %s1758_s2, 3072 }
  0x54   : > { %p1281_p2 = scmp.lt.u32.totalorder %s1593_s14, %s1758_s2  ;;  %p1282_p5 = scmp.lt.u32.totalorder %s1280_s7, %s1275_s5 }
  0x55   : > { %p1278_p8 = pnand %p1277_p6, %p1276_p4  ;;  %p1284_p11 = scmp.lt.u32.totalorder %s1275_s5, %s1593_s14 }
  0x56   : > { %p1283_p13 = por %p1282_p5, %p1281_p2 }
  0x57   : > { %p1279_p9 = pneg %p1278_p8 }
  0x58   : > { %p1285_p10 = por %p1284_p11, %p1283_p13 }
  0x5a   : > { %p1286_p7 = pnand %p1285_p10, %p1279_p9 }
  0x5c   : > { %1289 = shalt.err (!%p1286_p7)
}
  0x5d   : > { %s1290_s15 = scalar_lea.vmem %s1601_s18, 1024  ;;  %s1407_s12 = smov [#allocation7]  }
  0x5e   : > { %p1291_p4 = scmp.ne.s32.totalorder %s1601_s18, %s1290_s15  ;;  %s1295_s25 = sshll.u32 %s1407_s12, 4  ;;  %s1296_s25 = int_to_ptr.vmem [resolvable:$false] %s1295_s25 }
  0x5f   : > { %s1297_s19 = scalar_lea.vmem %s1296_s25, 2048  ;;  %p1298_p1 = scmp.lt.s32.totalorder %s1601_s18, %s1296_s25 }
  0x60   : > { %p1293_p8 = pnand %p1291_p4, %p1277_p6  ;;  %p1299_p2 = scmp.lt.s32.totalorder %s1297_s19, %s1290_s15 }
  0x62   : > { %p1294_p3 = pneg %p1293_p8  ;;  %p1300_p5 = por %p1299_p2, %p1298_p1 }
  0x64   : > { %p1301_p13 = pnand %p1300_p5, %p1294_p3 }
  0x66   : > { %1304 = shalt.err (!%p1301_p13)
}
  0x67   : > { %s1778_s20 = smov 4   ;;  %s1779_s5 = smov 64  }
  0x68   : > { %1143 = dma.hbm_to_vmem [thread:$0]  (!%p1597_p12), %s1593_s14, 1024, %s1601_s18, %s1603_s4, %s1779_s5, %s1779_s5, %s1778_s20  }
  0x69   : > { %169 = sbr.rel (%p1518_p0) target bundleno = 406 (0x196), region = 28  ;;  %s171_s21 = sand.u32 (!%p1518_p0), 1, %s1393_s26  }
  0x6a   : > { %s845_s13 = sshll.u32 (!%p1518_p0), %s171_s21, 7  ;;  %s172_s7 = scalar_lea.sflag (!%p1518_p0), [#allocation5], %s171_s21 }
  0x6b   : > { %s1637_s15 = scalar_lea.vmem (!%p1518_p0), [#allocation4], %s845_s13  ;;  %p1780_p1 = scmp.ne.s32.totalorder (!%p1518_p0), %s1768_s6, 0 }
  0x70   : > { %1364 = dma.done.wait (%p1780_p1), %s172_s7, 2048  }
  0x71   : > { %1366 = vsyncadd (%p1780_p1), %s172_s7, 4294965248  ;;  %s1644_s16 = sand.u32 1, %s1381_s23   ;;  %p1781_p0 = scmp.ne.s32.totalorder %s1773_s9, 0 }
  0x72   : > { %s846_s17 = sshll.u32 %s1644_s16, 6  ;;  %s181_s14 = scalar_lea.sflag [#allocation8], %s1644_s16 }
  0x73   : > { %s1648_s18 = scalar_lea.vmem [#allocation7], %s846_s17 }
  0x74   : > { %1368 = dma.done.wait (%p1781_p0), %s181_s14, 1024  }
  0x75   : > { %1370 = vsyncadd (%p1781_p0), %s181_s14, 4294966272  ;;  %v1211_v0 = vld [vmem:[%s1648_s18] sm:$0xff]   ;;  %v1212_v1 = vld [vmem:[%s1648_s18 + $0x8] sm:$0xff]   ;;  %s847_s6 = sshll.u32 %s1644_s16, 7  ;;  %s943_s4 = sshll.u32 %s1477_s28, 11 }
  0x76   : > { %1063 = vmatprep.subr.bf16.mxu0 %v1211_v0  ;;  %1111 = vmatprep.subr.bf16.mxu1 %v1211_v0  ;;  %v1213_v2 = vld [vmem:[%s1648_s18 + $0x10] sm:$0xff]   ;;  %v1214_v3 = vld [vmem:[%s1648_s18 + $0x18] sm:$0xff]   ;;  %v1219_v4 = vld [vmem:[%s1637_s15] sm:$0xff]   ;;  %s1679_s9 = scalar_lea.vmem [#allocation9], %s847_s6  ;;  %s1698_s20 = scalar_lea.hbm %s1759_s3, %s943_s4 }
  0x77   : > { %1064 = vmatpush3.bf16.msra.mxu0 %v1211_v0  ;;  %1119 = vmatpush3.bf16.msra.mxu1 %v1211_v0  ;;  %v1220_v5 = vld [vmem:[%s1637_s15 + $0x40] sm:$0xff]   ;;  %v1216_v7 = vld [vmem:[%s1648_s18 + $0x28] sm:$0xff]   ;;  %v1217_v8 = vld [vmem:[%s1648_s18 + $0x30] sm:$0xff]   ;;  %s739_s12 = sshll.u32 %s1679_s9, 4  ;;  %s726_s28 = scalar_lea.sflag [#allocation6], %s1644_s16  ;;  %s1700_s12 = int_to_ptr.vmem [resolvable:$true] %s739_s12 }
  0x78   : > { %1065 = vmatprep.subr.bf16.mxu0 %v1212_v1  ;;  %1112 = vmatprep.subr.bf16.mxu1 %v1212_v1  ;;  %v1215_v6 = vld [vmem:[%s1648_s18 + $0x20] sm:$0xff]   ;;  %v1218_v9 = vld [vmem:[%s1648_s18 + $0x38] sm:$0xff]   ;;  %v1221_v10 = vld [vmem:[%s1637_s15 + $0x8] sm:$0xff]   ;;  %s1305_s5 = scalar_lea.vmem %s1700_s12, 2048  ;;  %p1782_p7 = scmp.ne.s32.totalorder %s1774_s10, 0 }
  0x79   : > { %1079 = vmatprep.mubr.bf16.mxu0 %v1219_v4  ;;  %1095 = vmatprep.mubr.bf16.mxu1 %v1220_v5  ;;  %v1222_v11 = vld [vmem:[%s1637_s15 + $0x48] sm:$0xff]   ;;  %v1223_v12 = vld [vmem:[%s1637_s15 + $0x10] sm:$0xff]   ;;  %v1225_v14 = vld [vmem:[%s1637_s15 + $0x18] sm:$0xff]   ;;  %p1306_p3 = scmp.ne.s32.totalorder %s1700_s12, %s1305_s5  ;;  %s1408_s21 = smov [#allocation9]  }
  0x7a   : > { %v1224_v13 = vld [vmem:[%s1637_s15 + $0x50] sm:$0xff]   ;;  %v1226_v15 = vld [vmem:[%s1637_s15 + $0x58] sm:$0xff]   ;;  %v1227_v16 = vld [vmem:[%s1637_s15 + $0x20] sm:$0xff]   ;;  %s1309_s13 = sshll.u32 %s1408_s21, 4  ;;  %s1310_s13 = int_to_ptr.vmem [resolvable:$false] %s1309_s13 }
  0x7b   : > { %1066 = vmatpush3.bf16.msra.mxu0 %v1212_v1  ;;  %1120 = vmatpush3.bf16.msra.mxu1 %v1212_v1  ;;  %v1228_v17 = vld [vmem:[%s1637_s15 + $0x60] sm:$0xff]   ;;  %v1229_v18 = vld [vmem:[%s1637_s15 + $0x28] sm:$0xff]   ;;  %v1231_v20 = vld [vmem:[%s1637_s15 + $0x30] sm:$0xff]   ;;  %p1307_p12 = pnand %p1306_p3, %p1782_p7  ;;  %s1311_s7 = scalar_lea.vmem %s1310_s13, 4096 }
  0x7c   : > { %1067 = vmatprep.subr.bf16.mxu0 %v1213_v2  ;;  %1113 = vmatprep.subr.bf16.mxu1 %v1213_v2  ;;  %v1230_v19 = vld [vmem:[%s1637_s15 + $0x68] sm:$0xff]   ;;  %v1232_v21 = vld [vmem:[%s1637_s15 + $0x70] sm:$0xff]   ;;  %v1233_v22 = vld [vmem:[%s1637_s15 + $0x38] sm:$0xff]   ;;  %p1312_p9 = scmp.lt.s32.totalorder %s1700_s12, %s1310_s13  ;;  %p1313_p11 = scmp.lt.s32.totalorder %s1311_s7, %s1305_s5 }
  0x7d   : > { %v1234_v23 = vld [vmem:[%s1637_s15 + $0x78] sm:$0xff]   ;;  %p1308_p6 = pneg %p1307_p12 }
  0x7e   : > { %p1314_p10 = por %p1313_p11, %p1312_p9 }
  0x7f   : > { %1068 = vmatpush3.bf16.msra.mxu0 %v1213_v2  ;;  %1121 = vmatpush3.bf16.msra.mxu1 %v1213_v2 }
  0x80   : > { %1069 = vmatprep.subr.bf16.mxu0 %v1214_v3  ;;  %1114 = vmatprep.subr.bf16.mxu1 %v1214_v3  ;;  %p1315_p4 = pnand %p1314_p10, %p1308_p6 }
  0x83   : > { %1070 = vmatpush3.bf16.msra.mxu0 %v1214_v3  ;;  %1122 = vmatpush3.bf16.msra.mxu1 %v1214_v3 }
  0x84   : > { %1071 = vmatprep.subr.bf16.mxu0 %v1215_v6  ;;  %1115 = vmatprep.subr.bf16.mxu1 %v1215_v6 }
  0x87   : > { %1072 = vmatpush3.bf16.msra.mxu0 %v1215_v6  ;;  %1123 = vmatpush3.bf16.msra.mxu1 %v1215_v6 }
  0x88   : > { %1073 = vmatprep.subr.bf16.mxu0 %v1216_v7  ;;  %1116 = vmatprep.subr.bf16.mxu1 %v1216_v7 }
  0x8b   : > { %1074 = vmatpush3.bf16.msra.mxu0 %v1216_v7  ;;  %1124 = vmatpush3.bf16.msra.mxu1 %v1216_v7 }
  0x8c   : > { %1075 = vmatprep.subr.bf16.mxu0 %v1217_v8  ;;  %1117 = vmatprep.subr.bf16.mxu1 %v1217_v8 }
  0x8f   : > { %1076 = vmatpush3.bf16.msra.mxu0 %v1217_v8  ;;  %1125 = vmatpush3.bf16.msra.mxu1 %v1217_v8 }
  0x90   : > { %1077 = vmatprep.subr.bf16.mxu0 %v1218_v9  ;;  %1118 = vmatprep.subr.bf16.mxu1 %v1218_v9 }
  0x93   : > { %1078 = vmatpush3.bf16.msra.mxu0 %v1218_v9  ;;  %1126 = vmatpush3.bf16.msra.mxu1 %v1218_v9 }
  0x96   : > { %1080 = vmatmul.mubr.bf16.vlgmr.msra.gmra.mrb[0].mxu0 %v1221_v10  ;;  %1096 = vmatmul.mubr.bf16.vlgmr.msra.gmra.mrb[0].mxu1 %v1222_v11 }
  0x97   : > { %1083 = vmatprep.mubr.bf16.mxu0 %v1223_v12  ;;  %1099 = vmatprep.mubr.bf16.mxu1 %v1224_v13 }
  0x9e   : > { %1084 = vmatmul.mubr.bf16.gmra.mrb[4].mxu0 %v1225_v14  ;;  %1100 = vmatmul.mubr.bf16.gmra.mrb[4].mxu1 %v1226_v15 }
  0x9f   : > { %1087 = vmatprep.mubr.bf16.mxu0 %v1227_v16  ;;  %1103 = vmatprep.mubr.bf16.mxu1 %v1228_v17 }
  0xa6   : > { %1088 = vmatmul.mubr.bf16.gmra.mrb[8].mxu0 %v1229_v18  ;;  %1104 = vmatmul.mubr.bf16.gmra.mrb[8].mxu1 %v1230_v19 }
  0xa7   : > { %1091 = vmatprep.mubr.bf16.mxu0 %v1231_v20  ;;  %1107 = vmatprep.mubr.bf16.mxu1 %v1232_v21 }
  0xae   : > { %1092 = vmatmul.mubr.bf16.gmra.mrb[12].mxu0 %v1233_v22  ;;  %1108 = vmatmul.mubr.bf16.gmra.mrb[12].mxu1 %v1234_v23 }
 0x169   : > { %v1081_v24 = vpop.f32.mrb[0].mxu0  ;;  %v1097_v25 = vpop.f32.mrb[0].mxu1 }
 0x16a   : > { %v438_v26 = vpop.f32.mrb[1].mxu0  ;;  %v502_v27 = vpop.f32.mrb[1].mxu1 }
 0x16b   : > { %v1082_v28 = vpop.f32.mrb[2].mxu0  ;;  %v1098_v29 = vpop.f32.mrb[2].mxu1 }
 0x16c   : > { %v952_v30 = vpack.c.bf16 %v1082_v28, %v1081_v24  ;;  %v992_v31 = vpack.c.bf16 %v1098_v29, %v1097_v25  ;;  %v441_v32 = vpop.f32.mrb[3].mxu0  ;;  %v505_v33 = vpop.f32.mrb[3].mxu1 }
 0x16d   : > { %v947_v34 = vpack.c.bf16 %v441_v32, %v438_v26  ;;  %v987_v35 = vpack.c.bf16 %v505_v33, %v502_v27 }
 0x16e   : > { %1024 = vst [vmem:[%s1679_s9 + $0x8] sm:$0xff] %v952_v30   ;;  %1032 = vst [vmem:[%s1679_s9 + $0x48] sm:$0xff] %v992_v31  }
 0x16f   : > { %948 = vst [vmem:[%s1679_s9] sm:$0xff] %v947_v34   ;;  %1031 = vst [vmem:[%s1679_s9 + $0x40] sm:$0xff] %v987_v35  }
 0x171   : > { %v1085_v36 = vpop.f32.mrb[4].mxu0  ;;  %v1101_v37 = vpop.f32.mrb[4].mxu1 }
 0x172   : > { %v454_v38 = vpop.f32.mrb[5].mxu0  ;;  %v518_v39 = vpop.f32.mrb[5].mxu1 }
 0x173   : > { %v1086_v40 = vpop.f32.mrb[6].mxu0  ;;  %v1102_v41 = vpop.f32.mrb[6].mxu1 }
 0x174   : > { %v962_v42 = vpack.c.bf16 %v1086_v40, %v1085_v36  ;;  %v1002_v43 = vpack.c.bf16 %v1102_v41, %v1101_v37  ;;  %v457_v44 = vpop.f32.mrb[7].mxu0  ;;  %v521_v45 = vpop.f32.mrb[7].mxu1 }
 0x175   : > { %v957_v46 = vpack.c.bf16 %v457_v44, %v454_v38  ;;  %v997_v47 = vpack.c.bf16 %v521_v45, %v518_v39 }
 0x176   : > { %1026 = vst [vmem:[%s1679_s9 + $0x18] sm:$0xff] %v962_v42   ;;  %1034 = vst [vmem:[%s1679_s9 + $0x58] sm:$0xff] %v1002_v43  }
 0x177   : > { %1025 = vst [vmem:[%s1679_s9 + $0x10] sm:$0xff] %v957_v46   ;;  %1033 = vst [vmem:[%s1679_s9 + $0x50] sm:$0xff] %v997_v47  }
 0x179   : > { %v1089_v48 = vpop.f32.mrb[8].mxu0  ;;  %v1105_v49 = vpop.f32.mrb[8].mxu1 }
 0x17a   : > { %v470_v50 = vpop.f32.mrb[9].mxu0  ;;  %v534_v51 = vpop.f32.mrb[9].mxu1 }
 0x17b   : > { %v1090_v52 = vpop.f32.mrb[10].mxu0  ;;  %v1106_v53 = vpop.f32.mrb[10].mxu1 }
 0x17c   : > { %v972_v54 = vpack.c.bf16 %v1090_v52, %v1089_v48  ;;  %v1012_v55 = vpack.c.bf16 %v1106_v53, %v1105_v49  ;;  %v473_v56 = vpop.f32.mrb[11].mxu0  ;;  %v537_v57 = vpop.f32.mrb[11].mxu1 }
 0x17d   : > { %v967_v58 = vpack.c.bf16 %v473_v56, %v470_v50  ;;  %v1007_v59 = vpack.c.bf16 %v537_v57, %v534_v51 }
 0x17e   : > { %1028 = vst [vmem:[%s1679_s9 + $0x28] sm:$0xff] %v972_v54   ;;  %1036 = vst [vmem:[%s1679_s9 + $0x68] sm:$0xff] %v1012_v55  }
 0x17f   : > { %1027 = vst [vmem:[%s1679_s9 + $0x20] sm:$0xff] %v967_v58   ;;  %1035 = vst [vmem:[%s1679_s9 + $0x60] sm:$0xff] %v1007_v59  }
 0x181   : > { %v1093_v60 = vpop.f32.mrb[12].mxu0  ;;  %v1109_v61 = vpop.f32.mrb[12].mxu1 }
 0x182   : > { %v486_v62 = vpop.f32.mrb[13].mxu0  ;;  %v550_v63 = vpop.f32.mrb[13].mxu1 }
 0x183   : > { %v1094_v0 = vpop.f32.mrb[14].mxu0  ;;  %v1110_v1 = vpop.f32.mrb[14].mxu1 }
 0x184   : > { %v982_v2 = vpack.c.bf16 %v1094_v0, %v1093_v60  ;;  %v1022_v3 = vpack.c.bf16 %v1110_v1, %v1109_v61  ;;  %v489_v4 = vpop.f32.mrb[15].mxu0  ;;  %v553_v5 = vpop.f32.mrb[15].mxu1 }
 0x185   : > { %v977_v6 = vpack.c.bf16 %v489_v4, %v486_v62  ;;  %v1017_v7 = vpack.c.bf16 %v553_v5, %v550_v63 }
 0x186   : > { %1030 = vst [vmem:[%s1679_s9 + $0x38] sm:$0xff] %v982_v2   ;;  %1038 = vst [vmem:[%s1679_s9 + $0x78] sm:$0xff] %v1022_v3  }
 0x187   : > { %1029 = vst [vmem:[%s1679_s9 + $0x30] sm:$0xff] %v977_v6   ;;  %1037 = vst [vmem:[%s1679_s9 + $0x70] sm:$0xff] %v1017_v7  }
 0x188   : > { %1318 = shalt.err (!%p1315_p4)
}
 0x189   : > { %s1319_s15 = scalar_lea.hbm %s1698_s20, 2048  ;;  %s1323_s18 = scalar_lea.hbm %s1759_s3, 6144 }
 0x18a   : > { %p1320_p8 = scmp.ne.s32.totalorder %s1698_s20, %s1319_s15  ;;  %p1324_p13 = scmp.lt.u32.totalorder %s1698_s20, %s1759_s3 }
 0x18b   : > { %p1325_p1 = scmp.lt.u32.totalorder %s1323_s18, %s1319_s15  ;;  %p1327_p3 = scmp.lt.u32.totalorder %s1319_s15, %s1698_s20 }
 0x18c   : > { %p1321_p2 = pnand %p1320_p8, %p1782_p7 }
 0x18d   : > { %p1326_p0 = por %p1325_p1, %p1324_p13 }
 0x18e   : > { %p1322_p5 = pneg %p1321_p2 }
 0x18f   : > { %p1328_p12 = por %p1327_p3, %p1326_p0 }
 0x191   : > { %p1329_p6 = pnand %p1328_p12, %p1322_p5 }
 0x193   : > { %1332 = shalt.err (!%p1329_p6)
}
 0x194   : > { %s1409_s4 = smov 64   ;;  %s1410_s25 = smov 4  }
 0x195   : > { %1133 = dma.vmem_to_hbm [thread:$0]  (%p1782_p7), %s1700_s12, 2048, %s1698_s20, %s726_s28, %s1409_s4, %s1409_s4, %s1410_s25  }
 0x196 PF: > { %p1149_p9 = scmp.ge.s32.totalorder %s1401_s27, 2  ;;  %s754_s19 = sand.u32 1, %s1377_s22  }
 0x197   : > { %p1783_p11 = scmp.ne.s32.totalorder %s1775_s30, 0  ;;  %s755_s5 = scalar_lea.sflag [#allocation6], %s754_s19 }
 0x199   : > { %p1145_p10 = pnand %p1149_p9, %p1783_p11 }
 0x19b   : > { %1372 = dma.done.wait (!%p1145_p10), %s755_s5, 2048  }
 0x19c   : > { %1374 = vsyncadd (!%p1145_p10), %s755_s5, 4294965248  ;;  %p23_p7 = scmp.ge.s32.totalorder %s1480_s29, 5   ;;  %s1784_s22 = smov %s1381_s23 }
 0x19d   : > { %s1785_s23 = smov %s1385_s24  ;;  %s1786_s24 = smov %s1568_s8 }
 0x19e   : > { %s1787_s25 = smov %s1393_s26  ;;  %s1788_s26 = smov %s1397_s0 }
 0x19f   : > { %s1789_s0 = smov %s1507_s11  ;;  %s1790_s27 = smov %s1480_s29 }
 0x1a0   :  { %25 = sbr.rel (!%p23_p7) target bundleno = 21 (0x15), region = 86 }
 0x1a7   :  { %760 = vsyncpa [#allocation5], 1 }
 0x1a8   :  { %762 = vsyncpa [#allocation5 + $0x1], 1 }
 0x1a9   :  { %763 = vsyncpa [#allocation8], 1 }
 0x1aa   :  { %765 = vsyncpa [#allocation8 + $0x1], 1 }
 0x1ab   :  { %766 = vsyncpa [#allocation6], 1 }
 0x1ac   :  { %768 = vsyncpa [#allocation6 + $0x1], 1 }

</bundles_post_ra>
